<compile_context>
chip_gen: v6e
topology: v6e:2x2x1
jax: 0.10.0
libtpu: 0.0.40
codegen_flags: <defaults>
</compile_context>

<pallas_src>
import jax
import jax.numpy as jnp
from jax.experimental import pallas as pl
from jax.experimental.pallas import tpu as pltpu


def _round_up(x, m):
    return ((x + m - 1) // m) * m


def _vmem_capacity_bytes():
    """Per-core VMEM capacity; conservative fallback if the query fails."""
    try:
        return int(pltpu.get_tpu_info().vmem_capacity_bytes)
    except Exception:
        return 64 * 1024 * 1024  # v7x per-TC figure (most conservative)


def _make_kernel(temperature, w_box_to_token, w_token_to_box,
                 q_valid, t_valid, q_padded, t_padded):
    inv_temp = 1.0 / float(temperature)
    w_bt = float(w_box_to_token)
    w_tb = float(w_token_to_box)
    mask_rows = q_padded != q_valid        # static: padded query rows exist?
    mask_cols = t_padded != t_valid        # static: padded token cols exist?
    NEG = -1e30                            # python float -> jaxpr literal (no captured consts)

    def kernel(q_ref, t_ref, pm_ref, out_ref):
        q = q_ref[...]                     # (BB, Qp, D)
        t = t_ref[...]                     # (BB, D, Tp)  pre-transposed
        if inv_temp != 1.0:
            q = q * inv_temp               # scale small (Qp,D) tile, not (Qp,Tp) logits

        # logits = (q / temperature) @ tokens^T, f32 MXU accumulation.
        logits = jnp.einsum('bqd,bdt->bqt', q, t,
                            preferred_element_type=jnp.float32)

        # Positive map, materialized once (wrapper guarantees 0/1 values).
        pmf = pm_ref[...].astype(jnp.float32)          # (BB, Qp, Tp)
        pos_logits = -logits * pmf                     # finite logits -> no NaN

        bb, qp, tp = logits.shape

        # Mask padded rows/cols only when padding actually exists.
        masked = logits
        if mask_cols:
            col_valid = jax.lax.broadcasted_iota(jnp.int32, (1, 1, tp), 2) < t_valid
            masked = jnp.where(col_valid, masked, NEG)
        if mask_rows:
            row_valid = jax.lax.broadcasted_iota(jnp.int32, (1, qp, 1), 1) < q_valid
            masked = jnp.where(row_valid, masked, NEG)

        # One shared exp pass feeds both logsumexps (per-batch-element max).
        m = jnp.max(jnp.max(masked, axis=2, keepdims=True), axis=1, keepdims=True)
        e = jnp.exp(masked - m)                        # single (BB,Qp,Tp) EUP pass

        # ---- box -> token (reduce over token axis = 2) ----
        nb_pos_t = jnp.sum(pmf, axis=2, keepdims=True)           # (BB,Qp,1)
        pos_term_t = jnp.sum(pos_logits, axis=2, keepdims=True)  # (BB,Qp,1)
        neg_term_t = jnp.log(jnp.sum(e, axis=2, keepdims=True)) + m
        box_terms = pos_term_t / (nb_pos_t + 1e-6) + neg_term_t
        box_to_token = jnp.sum(jnp.where(nb_pos_t > 0, box_terms, 0.0))

        # ---- token -> box (reduce over query axis = 1) ----
        nb_pos_q = jnp.sum(pmf, axis=1, keepdims=True)           # (BB,1,Tp)
        pos_term_q = jnp.sum(pos_logits, axis=1, keepdims=True)  # (BB,1,Tp)
        neg_term_q = jnp.log(jnp.sum(e, axis=1, keepdims=True)) + m
        tok_terms = pos_term_q / (nb_pos_q + 1e-6) + neg_term_q
        token_to_box = jnp.sum(jnp.where(nb_pos_q > 0, tok_terms, 0.0))

        total = (w_bt * box_to_token + w_tb * token_to_box) * 0.5

        # Lane-dense unmasked (8,128) store; wrapper reads element [0, 0].
        out_ref[...] = jnp.broadcast_to(total, out_ref.shape).astype(out_ref.dtype)

    return kernel


def contrastive_align_loss(proj_queries, proj_tokens, positive_map,
                           temperature=1.0,
                           box_to_token_loss_weight=1.0,
                           token_to_box_loss_weight=1.0,
                           matmul_dtype=None):
    """Pallas implementation of ContrastiveAlignLoss.forward (given positive_map).

    matmul_dtype: pass jnp.bfloat16 for ~3x MXU throughput (f32 accumulation &
    post-matmul math retained); default keeps the input dtype (exact parity).
    """
    B, Q, D = proj_queries.shape
    Bt, T, Dt = proj_tokens.shape
    assert (Bt, Dt) == (B, D)
    assert positive_map.shape == (B, Q, T)

    # --- host-side layout plumbing (XLA) ---
    mm_dtype = jnp.dtype(matmul_dtype) if matmul_dtype is not None else proj_queries.dtype
    queries = proj_queries.astype(mm_dtype)
    tokens_t = jnp.swapaxes(proj_tokens, 1, 2).astype(mm_dtype)   # (B, D, T): MXU-ready
    pm_i8 = (positive_map != 0).astype(jnp.int8)                  # 1 byte/elem, values 0/1

    # --- padding to tile-friendly shapes ---
    Qp = _round_up(Q, 32)      # int8 sublane tile is (32,128)
    Tp = _round_up(T, 128)     # lane-dense token axis

    # --- chip-aware batch-block sizing ---
    in_bytes = jnp.dtype(mm_dtype).itemsize
    budget = (_vmem_capacity_bytes() * 3) // 4     # ~48 MiB on v7x, ~96 MiB v5e/v6e

    def block_bytes(bb_):
        q_blk = bb_ * Qp * D * in_bytes
        t_blk = bb_ * D * Tp * in_bytes
        pm_blk = bb_ * Qp * Tp
        # 2x double-buffered pipelined inputs + ~3 full-size f32 temporaries
        return 2 * (q_blk + t_blk + pm_blk) + 3 * bb_ * Qp * Tp * 4 + 2 * 8 * 128 * 4

    bb = max(1, min(B, 16))
    while bb > 1 and block_bytes(bb) > budget:
        bb //= 2
    if B > 1:                       # keep >= 2 grid blocks so both v7x TCs get work
        bb = min(bb, -(-B // 2))
    Bp = _round_up(B, bb)
    nblk = Bp // bb

    def pad(x, targets):
        pads = [(0, tgt - s) for s, tgt in zip(x.shape, targets)]
        return jnp.pad(x, pads) if any(p[1] for p in pads) else x

    q_p = pad(queries, (Bp, Qp, D))
    t_p = pad(tokens_t, (Bp, D, Tp))
    pm_p = pad(pm_i8, (Bp, Qp, Tp))

    kernel = _make_kernel(temperature, box_to_token_loss_weight,
                          token_to_box_loss_weight, Q, T, Qp, Tp)

    partials = pl.pallas_call(
        kernel,
        out_shape=jax.ShapeDtypeStruct((nblk, 8, 128), jnp.float32),
        grid_spec=pltpu.PrefetchScalarGridSpec(
            num_scalar_prefetch=0,
            grid=(nblk,),
            in_specs=[
                pl.BlockSpec((bb, Qp, D), lambda b: (b, 0, 0)),
                pl.BlockSpec((bb, D, Tp), lambda b: (b, 0, 0)),
                pl.BlockSpec((bb, Qp, Tp), lambda b: (b, 0, 0)),
            ],
            out_specs=pl.BlockSpec((None, 8, 128), lambda b: (b, 0, 0)),
        ),
        compiler_params=pltpu.CompilerParams(
            dimension_semantics=("parallel",),   # batch blocks are independent
            vmem_limit_bytes=int(budget),
        ),
    )(q_p, t_p, pm_p)

    # Only [0,0] of each (8,128) partial block is meaningful (all lanes carry it).
    return jnp.sum(partials[:, 0, 0])


def _reference(proj_queries, proj_tokens, positive_map, temperature=1.0,
               w_bt=1.0, w_tb=1.0):
    """Pure-JAX reference mirroring the PyTorch semantics (exact math)."""
    logits = jnp.einsum('bqd,btd->bqt', proj_queries, proj_tokens) / temperature
    pm = positive_map.astype(jnp.bool_)
    pos_logits = jnp.where(pm, -logits, 0.0)

    boxes_with_pos = jnp.any(pm, axis=2)
    pos_term = pos_logits.sum(2)
    neg_term = jax.nn.logsumexp(logits, axis=2)
    nb_pos = pm.sum(2) + 1e-6
    box_loss = jnp.where(boxes_with_pos, pos_term / nb_pos + neg_term, 0.0).sum() * w_bt

    tokens_with_pos = jnp.any(pm, axis=1)
    pos_term = pos_logits.sum(1)
    neg_term = jax.nn.logsumexp(logits, axis=1)
    nb_pos = pm.sum(1) + 1e-6
    tok_loss = jnp.where(tokens_with_pos, pos_term / nb_pos + neg_term, 0.0).sum() * w_tb

    return (box_loss + tok_loss) / 2.0


if __name__ == "__main__":
    # Small shapes: batch=2, queries=8, tokens=8, hidden=32
    B, Q, T, D = 2, 8, 8, 32
    key = jax.random.PRNGKey(0)
    kq, kt, kp = jax.random.split(key, 3)

    proj_queries = jax.random.normal(kq, (B, Q, D), dtype=jnp.float32)
    proj_tokens = jax.random.normal(kt, (B, T, D), dtype=jnp.float32)
    # TODO(synk): the real positive_map comes from HuggingFace tokenized
    # char_to_token spans (_get_positive_map); a synthetic mask stands in here.
    positive_map = jax.random.uniform(kp, (B, Q, T)) < 0.25

    # Case 1: default temperature / weights, raw (unnormalized) embeddings.
    loss = contrastive_align_loss(proj_queries, proj_tokens, positive_map,
                                  temperature=1.0,
                                  box_to_token_loss_weight=1.0,
                                  token_to_box_loss_weight=1.0)
    loss = jax.block_until_ready(loss)
    ref = _reference(proj_queries, proj_tokens, positive_map, temperature=1.0)
    assert jnp.allclose(loss, ref, rtol=1e-4, atol=1e-4), (loss, ref)

    # Case 2: realistic contrastive regime — L2-normalized embeddings, low
    # temperature, non-default weights. (The shared-exp logsumexp assumes the
    # per-batch logit spread stays < ~80, which normalized embeddings with
    # temperature >= ~0.02 guarantee.)
    qn = proj_queries / jnp.linalg.norm(proj_queries, axis=-1, keepdims=True)
    tn = proj_tokens / jnp.linalg.norm(proj_tokens, axis=-1, keepdims=True)
    loss2 = contrastive_align_loss(qn, tn, positive_map, temperature=0.07,
                                   box_to_token_loss_weight=2.0,
                                   token_to_box_loss_weight=0.5)
    loss2 = jax.block_until_ready(loss2)
    ref2 = _reference(qn, tn, positive_map, temperature=0.07, w_bt=2.0, w_tb=0.5)
    assert jnp.allclose(loss2, ref2, rtol=1e-4, atol=1e-3), (loss2, ref2)

    print("KERNEL_OK")
</pallas_src>

<mosaic_0001>
module attributes {stable_mosaic.version = 11 : i64} {
  func.func @kernel(%arg0: i32, %arg1: memref<1x32x32xf32, #tpu.memory_space<vmem>>, %arg2: memref<1x32x128xf32, #tpu.memory_space<vmem>>, %arg3: memref<1x32x128xi8, #tpu.memory_space<vmem>>, %arg4: memref<1x8x128xf32, #tpu.memory_space<vmem>>) attributes {dimension_semantics = [#tpu.dimension_semantics<parallel>], iteration_bounds = array<i64: 2>, scalar_prefetch = 0 : i64, scratch_operands = 0 : i64, tpu.core_type = #tpu.core_type<tc>, window_params = [{transform_indices = @transform_0, window_bounds = array<i64: 1, 32, 32>}, {transform_indices = @transform_1, window_bounds = array<i64: 1, 32, 128>}, {transform_indices = @transform_2, window_bounds = array<i64: 1, 32, 128>}, {transform_indices = @transform_3, window_bounds = array<i64: 1, 8, 128>}]} {
    %c0 = arith.constant 0 : index
    %c0_0 = arith.constant 0 : index
    %c0_1 = arith.constant 0 : index
    %0 = vector.load %arg1[%c0, %c0_0, %c0_1] : memref<1x32x32xf32, #tpu.memory_space<vmem>>, vector<1x32x32xf32>
    %c0_2 = arith.constant 0 : index
    %c0_3 = arith.constant 0 : index
    %c0_4 = arith.constant 0 : index
    %1 = vector.load %arg2[%c0_2, %c0_3, %c0_4] : memref<1x32x128xf32, #tpu.memory_space<vmem>>, vector<1x32x128xf32>
    "tpu.trace_start"() <{level = 10 : i32, message = "bqd,bdt->bqt"}> : () -> ()
    %cst = arith.constant dense<0.000000e+00> : vector<1x32x128xf32>
    %2 = tpu.matmul %0, %1, %cst {dimension_numbers = #tpu.dot_dimension_numbers<[2], [1], [1], [2], [0, 0, 0, 1, 1, 2], [0], [0]>} : vector<1x32x32xf32>, vector<1x32x128xf32>, vector<1x32x128xf32> -> vector<1x32x128xf32>
    "tpu.trace_stop"() : () -> ()
    %c0_5 = arith.constant 0 : index
    %c0_6 = arith.constant 0 : index
    %c0_7 = arith.constant 0 : index
    %3 = vector.load %arg3[%c0_5, %c0_6, %c0_7] : memref<1x32x128xi8, #tpu.memory_space<vmem>>, vector<1x32x128xi8>
    %4 = arith.sitofp %3 : vector<1x32x128xi8> to vector<1x32x128xf32>
    %cst_8 = arith.constant 0.000000e+00 : f32
    %5 = vector.broadcast %cst_8 : f32 to vector<1x32x128xf32>
    %6 = arith.subf %5, %2 : vector<1x32x128xf32>
    %7 = arith.mulf %6, %4 : vector<1x32x128xf32>
    %8 = tpu.iota {dimensions = array<i32: 2>} : vector<1x1x128xi32>
    %c8_i32 = arith.constant 8 : i32
    %9 = vector.broadcast %c8_i32 : i32 to vector<1x1x128xi32>
    %10 = arith.cmpi slt, %8, %9 : vector<1x1x128xi32>
    %cst_9 = arith.constant -1.000000e+30 : f32
    %11 = vector.shape_cast %10 : vector<1x1x128xi1> to vector<1x1x128xi1>
    %12 = vector.broadcast %11 : vector<1x1x128xi1> to vector<1x32x128xi1>
    %13 = vector.broadcast %cst_9 : f32 to vector<1x32x128xf32>
    %14 = arith.select %12, %2, %13 : vector<1x32x128xi1>, vector<1x32x128xf32>
    %15 = tpu.iota {dimensions = array<i32: 1>} : vector<1x32x1xi32>
    %c8_i32_10 = arith.constant 8 : i32
    %16 = vector.broadcast %c8_i32_10 : i32 to vector<1x32x1xi32>
    %17 = arith.cmpi slt, %15, %16 : vector<1x32x1xi32>
    %cst_11 = arith.constant -1.000000e+30 : f32
    %18 = vector.shape_cast %17 : vector<1x32x1xi1> to vector<1x32x1xi1>
    %19 = vector.broadcast %18 : vector<1x32x1xi1> to vector<1x32x128xi1>
    %20 = vector.broadcast %cst_11 : f32 to vector<1x32x128xf32>
    %21 = arith.select %19, %14, %20 : vector<1x32x128xi1>, vector<1x32x128xf32>
    %cst_12 = arith.constant dense<0xFF800000> : vector<1x32xf32>
    %22 = vector.multi_reduction <maximumf>, %21, %cst_12 [2] : vector<1x32x128xf32> to vector<1x32xf32>
    %23 = vector.shape_cast %22 : vector<1x32xf32> to vector<1x32x1xf32>
    %cst_13 = arith.constant dense<0xFF800000> : vector<1x1xf32>
    %24 = vector.multi_reduction <maximumf>, %23, %cst_13 [1] : vector<1x32x1xf32> to vector<1x1xf32>
    %25 = vector.shape_cast %24 : vector<1x1xf32> to vector<1x1x1xf32>
    %26 = vector.broadcast %25 : vector<1x1x1xf32> to vector<1x32x128xf32>
    %27 = arith.subf %21, %26 : vector<1x32x128xf32>
    %28 = math.exp %27 : vector<1x32x128xf32>
    %cst_14 = arith.constant dense<0.000000e+00> : vector<1x32xf32>
    %29 = vector.multi_reduction <add>, %4, %cst_14 [2] : vector<1x32x128xf32> to vector<1x32xf32>
    %30 = vector.shape_cast %29 : vector<1x32xf32> to vector<1x32x1xf32>
    %cst_15 = arith.constant dense<0.000000e+00> : vector<1x32xf32>
    %31 = vector.multi_reduction <add>, %7, %cst_15 [2] : vector<1x32x128xf32> to vector<1x32xf32>
    %32 = vector.shape_cast %31 : vector<1x32xf32> to vector<1x32x1xf32>
    %cst_16 = arith.constant dense<0.000000e+00> : vector<1x32xf32>
    %33 = vector.multi_reduction <add>, %28, %cst_16 [2] : vector<1x32x128xf32> to vector<1x32xf32>
    %34 = vector.shape_cast %33 : vector<1x32xf32> to vector<1x32x1xf32>
    %35 = math.log %34 : vector<1x32x1xf32>
    %36 = vector.broadcast %25 : vector<1x1x1xf32> to vector<1x32x1xf32>
    %37 = arith.addf %35, %36 : vector<1x32x1xf32>
    %cst_17 = arith.constant 9.99999997E-7 : f32
    %38 = vector.broadcast %cst_17 : f32 to vector<1x32x1xf32>
    %39 = arith.addf %30, %38 : vector<1x32x1xf32>
    %40 = arith.divf %32, %39 : vector<1x32x1xf32>
    %41 = arith.addf %40, %37 : vector<1x32x1xf32>
    %cst_18 = arith.constant 0.000000e+00 : f32
    %42 = vector.broadcast %cst_18 : f32 to vector<1x32x1xf32>
    %43 = arith.cmpf ogt, %30, %42 : vector<1x32x1xf32>
    %cst_19 = arith.constant 0.000000e+00 : f32
    %44 = vector.broadcast %cst_19 : f32 to vector<1x32x1xf32>
    %45 = arith.select %43, %41, %44 : vector<1x32x1xi1>, vector<1x32x1xf32>
    %46 = vector.shape_cast %45 : vector<1x32x1xf32> to vector<1x1x32x1xf32>
    %cst_20 = arith.constant dense<0.000000e+00> : vector<1xf32>
    %47 = vector.multi_reduction <add>, %46, %cst_20 [1, 2, 3] : vector<1x1x32x1xf32> to vector<1xf32>
    %48 = vector.shape_cast %47 : vector<1xf32> to vector<1x1x1x1xf32>
    %49 = vector.extract %48[0, 0, 0, 0] : f32 from vector<1x1x1x1xf32>
    %cst_21 = arith.constant dense<0.000000e+00> : vector<1x128xf32>
    %50 = vector.multi_reduction <add>, %4, %cst_21 [1] : vector<1x32x128xf32> to vector<1x128xf32>
    %51 = vector.shape_cast %50 : vector<1x128xf32> to vector<1x1x128xf32>
    %cst_22 = arith.constant dense<0.000000e+00> : vector<1x128xf32>
    %52 = vector.multi_reduction <add>, %7, %cst_22 [1] : vector<1x32x128xf32> to vector<1x128xf32>
    %53 = vector.shape_cast %52 : vector<1x128xf32> to vector<1x1x128xf32>
    %cst_23 = arith.constant dense<0.000000e+00> : vector<1x128xf32>
    %54 = vector.multi_reduction <add>, %28, %cst_23 [1] : vector<1x32x128xf32> to vector<1x128xf32>
    %55 = vector.shape_cast %54 : vector<1x128xf32> to vector<1x1x128xf32>
    %56 = math.log %55 : vector<1x1x128xf32>
    %57 = vector.broadcast %25 : vector<1x1x1xf32> to vector<1x1x128xf32>
    %58 = arith.addf %56, %57 : vector<1x1x128xf32>
    %cst_24 = arith.constant 9.99999997E-7 : f32
    %59 = vector.broadcast %cst_24 : f32 to vector<1x1x128xf32>
    %60 = arith.addf %51, %59 : vector<1x1x128xf32>
    %61 = arith.divf %53, %60 : vector<1x1x128xf32>
    %62 = arith.addf %61, %58 : vector<1x1x128xf32>
    %cst_25 = arith.constant 0.000000e+00 : f32
    %63 = vector.broadcast %cst_25 : f32 to vector<1x1x128xf32>
    %64 = arith.cmpf ogt, %51, %63 : vector<1x1x128xf32>
    %cst_26 = arith.constant 0.000000e+00 : f32
    %65 = vector.broadcast %cst_26 : f32 to vector<1x1x128xf32>
    %66 = arith.select %64, %62, %65 : vector<1x1x128xi1>, vector<1x1x128xf32>
    %67 = vector.shape_cast %66 : vector<1x1x128xf32> to vector<1x1x1x128xf32>
    %cst_27 = arith.constant dense<0.000000e+00> : vector<1xf32>
    %68 = vector.multi_reduction <add>, %67, %cst_27 [1, 2, 3] : vector<1x1x1x128xf32> to vector<1xf32>
    %69 = vector.shape_cast %68 : vector<1xf32> to vector<1x1x1x1xf32>
    %70 = vector.extract %69[0, 0, 0, 0] : f32 from vector<1x1x1x1xf32>
    %cst_28 = arith.constant 1.000000e+00 : f32
    %71 = arith.mulf %cst_28, %49 : f32
    %cst_29 = arith.constant 1.000000e+00 : f32
    %72 = arith.mulf %cst_29, %70 : f32
    %73 = arith.addf %71, %72 : f32
    %cst_30 = arith.constant 5.000000e-01 : f32
    %74 = arith.mulf %73, %cst_30 : f32
    %75 = vector.broadcast %74 : f32 to vector<8x128xf32>
    %c0_31 = arith.constant 0 : index
    %c0_32 = arith.constant 0 : index
    %c0_33 = arith.constant 0 : index
    %76 = vector.load %arg4[%c0_31, %c0_32, %c0_33] : memref<1x8x128xf32, #tpu.memory_space<vmem>>, vector<1x8x128xf32>
    %77 = vector.shape_cast %76 : vector<1x8x128xf32> to vector<8x128xf32>
    %78 = vector.shape_cast %75 : vector<8x128xf32> to vector<1x8x128xf32>
    tpu.vector_store %arg4[%c0_31, %c0_32, %c0_33], %78 {strides = array<i32>} : memref<1x8x128xf32, #tpu.memory_space<vmem>>, vector<1x8x128xf32>,
    return
  }
  func.func @transform_0(%arg0: i32) -> (i32, i32, i32) {
    %c0_i32 = arith.constant 0 : i32
    %c0_i32_0 = arith.constant 0 : i32
    %c0_i32_1 = arith.constant 0 : i32
    return %arg0, %c0_i32, %c0_i32_0 : i32, i32, i32
  }
  func.func @transform_1(%arg0: i32) -> (i32, i32, i32) {
    %c0_i32 = arith.constant 0 : i32
    %c0_i32_0 = arith.constant 0 : i32
    %c0_i32_1 = arith.constant 0 : i32
    return %arg0, %c0_i32, %c0_i32_0 : i32, i32, i32
  }
  func.func @transform_2(%arg0: i32) -> (i32, i32, i32) {
    %c0_i32 = arith.constant 0 : i32
    %c0_i32_0 = arith.constant 0 : i32
    %c0_i32_1 = arith.constant 0 : i32
    return %arg0, %c0_i32, %c0_i32_0 : i32, i32, i32
  }
  func.func @transform_3(%arg0: i32) -> (i32, i32, i32) {
    %c0_i32 = arith.constant 0 : i32
    %c0_i32_0 = arith.constant 0 : i32
    %c0_i32_1 = arith.constant 0 : i32
    return %arg0, %c0_i32, %c0_i32_0 : i32, i32, i32
  }
}

</mosaic_0001>

<bundles_post_ra>
// kernel: tpu_custom_call.1
= control target key start
LH: loop header
LB: loop body
LE: loop exit
PB: predicated region body
PF: predicated region fallthrough
CT: control target
= control target key end

     0   :  { %s1287_s0 = inlined_call_operand.hbm [shape: f32[2,32,32], index: 0, kind: input, shape index: {}]   ;;  %s1288_s1 = inlined_call_operand.hbm [shape: f32[2,32,128], index: 1, kind: input, shape index: {}]   ;;  %s1289_s2 = inlined_call_operand.hbm [shape: s8[2,32,128], index: 2, kind: input, shape index: {}]   ;;  %s1290_s3 = inlined_call_operand.hbm [shape: f32[2,8,128], index: 3, kind: output, shape index: {}]  }
   0x1   :  { %1298 = sst [smem:[#allocation15_spill]] %s1287_s0 }
   0x2   :  { %1299 = sst [smem:[#allocation16_spill]] %s1288_s1 }
   0x3   :  { %8 = vsyncpa [#allocation3], 0 }
   0x4   :  { %10 = vsyncpa [#allocation3 + $0x1], 0 }
   0x5   :  { %11 = vsyncpa [#allocation6], 0 }
   0x6   :  { %13 = vsyncpa [#allocation6 + $0x1], 0 }
   0x7   :  { %14 = vsyncpa [#allocation4], 0 }
   0x8   :  { %16 = vsyncpa [#allocation4 + $0x1], 0  ;;  %s1024_s12 = smov 0   ;;  %s1026_s13 = smov 0  }
   0x9   :  { %s1028_s14 = smov 0   ;;  %s1030_s15 = smov 0  }
   0xa LB: > { %1300 = sst [smem:[#allocation12_spill]] %s991_s14  ;;  %s1045_s16 = sadd.s32 4294967295, %s995_s15   ;;  %s995_s15 = sphi %s1030_s15, %s1319_s15   ;;  %s991_s14 = sphi %s1028_s14, %s1321_s14   ;;  %s987_s13 = sphi %s1026_s13, %s1323_s13   ;;  %s983_s12 = sphi %s1024_s12, %s1322_s12  }
   0xb   : > { %s700_s17 = sadd.s32 4294967294, %s995_s15   ;;  %s1049_s18 = sadd.s32 1, %s995_s15  }
   0xc   : > { %1301 = sst [smem:[#allocation13_spill]] %s1049_s18  ;;  %s29_s19 = sadd.s32 1, %s991_s14 }
   0xd   : > { %s26_s20 = ssub.s32 %s995_s15, %s1049_s18  ;;  %p36_p0 = scmp.ne.s32.totalorder %s991_s14, %s987_s13 }
   0xe   : > { %p27_p1 = scmp.eq.s32.totalorder %s26_s20, 0  ;;  %p37_p2 = scmp.eq.s32.totalorder %s995_s15, 0 }
   0xf   : > { %p42_p3 = scmp.ne.s32.totalorder %s987_s13, %s983_s12  ;;  %p43_p4 = scmp.eq.s32.totalorder %s1045_s16, 0 }
  0x10   : > { %s1061_s21 = scalar_select %p27_p1, %s991_s14, %s29_s19  }
  0x11   : > { %p38_p5 = por %p37_p2, %p36_p0  ;;  %p1063_p6 = por %p43_p4, %p42_p3 }
  0x12   : > { %1302 = sst [smem:[#allocation14_spill]] %s1061_s21  ;;  %p118_p7 = scmp.eq.s32.totalorder %s1045_s16, 1 }
  0x13   : > { %s1303_s22 = scalar_select %p1063_p6, 1, 0 }
  0x14   : > { %p124_p8 = scmp.eq.s32.totalorder %s700_s17, 1  ;;  %p782_p10 = scmp.lt.s32.totalorder %s995_s15, 2 }
  0x15   : > { %p1070_p11 = por %p118_p7, %p36_p0  ;;  %s1079_s25 = sand.u32 1, %s991_s14  }
  0x16   : > { %p1074_p12 = por %p124_p8, %p42_p3  ;;  %s724_s26 = sshll.u32 %s995_s15, 9 }
  0x17   : > { %s1304_s23 = scalar_select %p1070_p11, 1, 0 }
  0x18   : > { %s1305_s24 = scalar_select %p1074_p12, 1, 0 }
  0x19   : > { %s703_s27 = sshll.u32 %s1079_s25, 5  ;;  %p1083_p13 = pnand %p782_p10, %p38_p5 }
  0x1a   : > { %s165_s29 = sand.u32 1, %s995_s15   ;;  %s1307_s1 = sld [smem:[#allocation16_spill]] }
  0x1b   : > { %s169_s6 = scalar_lea.vmem [#allocation5], %s703_s27  ;;  %s1100_s8 = scalar_lea.sflag [#allocation6], %s165_s29 }
  0x1c   : > { %s176_s7 = sshll.u32 %s169_s6, 4  ;;  %p1106_p2 = pneg %p1083_p13  ;;  %s1097_s7 = int_to_ptr.vmem [resolvable:$true] %s176_s7 }
  0x20   : > { %s1093_s5 = scalar_lea.hbm %s1307_s1, %s724_s26  ;;  %s848_s19 = scalar_lea.hbm %s1307_s1, 1024 }
  0x21   : > { %s843_s9 = scalar_lea.hbm %s1093_s5, 512  ;;  %p849_p5 = scmp.lt.s32.totalorder %s1093_s5, %s1307_s1 }
  0x22   : > { %p844_p1 = scmp.ne.s32.totalorder %s1093_s5, %s843_s9  ;;  %p850_p7 = scmp.lt.s32.totalorder %s848_s19, %s843_s9 }
  0x24   : > { %p846_p3 = pnand %p1106_p2, %p844_p1  ;;  %p851_p8 = por %p850_p7, %p849_p5 }
  0x26   : > { %p847_p4 = pneg %p846_p3 }
  0x28   : > { %p852_p10 = pnand %p851_p8, %p847_p4 }
  0x2a   : > { %855 = shalt.err (!%p852_p10)
}
  0x2b   : > { %s856_s29 = scalar_lea.vmem %s1097_s7, 512  ;;  %s997_s4 = smov [#allocation5]  }
  0x2c   : > { %p857_p9 = scmp.ne.s32.totalorder %s1097_s7, %s856_s29  ;;  %s861_s6 = sshll.u32 %s997_s4, 4  ;;  %s862_s6 = int_to_ptr.vmem [resolvable:$false] %s861_s6 }
  0x2d   : > { %s863_s11 = scalar_lea.vmem %s862_s6, 1024  ;;  %p864_p0 = scmp.lt.s32.totalorder %s1097_s7, %s862_s6 }
  0x2e   : > { %p859_p1 = pnand %p857_p9, %p1106_p2  ;;  %p865_p12 = scmp.lt.s32.totalorder %s863_s11, %s856_s29 }
  0x30   : > { %p860_p3 = pneg %p859_p1  ;;  %p866_p11 = por %p865_p12, %p864_p0 }
  0x32   : > { %p867_p6 = pnand %p866_p11, %p860_p3 }
  0x34   : > { %870 = shalt.err (!%p867_p6)
}
  0x35   : > { %s1293_s9 = smov 128   ;;  %s1294_s17 = smov 8  }
  0x36   : > { %774 = dma.hbm_to_vmem [thread:$0]  (!%p1083_p13), %s1093_s5, 512, %s1097_s7, %s1100_s8, %s1293_s9, %s1293_s9, %s1294_s17  }
  0x37   : > { %p202_p9 = scmp.lt.s32.totalorder %s995_s15, 3  ;;  %s1309_s0 = sld [smem:[#allocation15_spill]] }
  0x38   : > { %p1310_p6 = scmp.ge.s32.totalorder %s995_s15, 1  ;;  %s148_s4 = scalar_lea.vmem [#allocation2], %s703_s27 }
  0x39   : > { %s155_s6 = sshll.u32 %s148_s4, 4  ;;  %s709_s5 = sshll.u32 %s1079_s25, 3  ;;  %s1148_s6 = int_to_ptr.vmem [resolvable:$true] %s155_s6 }
  0x3a   : > { %p1142_p11 = pnand %p1310_p6, %p202_p9  ;;  %s145_s7 = scalar_lea.sflag [#allocation3], %s1079_s25 }
  0x3c   : > { %s1311_s29 = scalar_select %p1142_p11, 1, 0 }
  0x3d   : > { %s1138_s30 = scalar_lea.hbm %s1309_s0, %s724_s26  ;;  %s876_s20 = scalar_lea.hbm %s1309_s0, 1024 }
  0x3e   : > { %s871_s11 = scalar_lea.hbm %s1138_s30, 512  ;;  %p877_p5 = scmp.lt.s32.totalorder %s1138_s30, %s1309_s0 }
  0x3f   : > { %p872_p12 = scmp.ne.s32.totalorder %s1138_s30, %s871_s11  ;;  %p878_p7 = scmp.lt.s32.totalorder %s876_s20, %s871_s11 }
  0x41   : > { %p874_p0 = pnand %p872_p12, %p1106_p2  ;;  %p879_p8 = por %p878_p7, %p877_p5 }
  0x43   : > { %p875_p4 = pneg %p874_p0 }
  0x45   : > { %p880_p10 = pnand %p879_p8, %p875_p4 }
  0x47   : > { %883 = shalt.err (!%p880_p10)
}
  0x48   : > { %s884_s27 = scalar_lea.vmem %s1148_s6, 512  ;;  %s1000_s4 = smov [#allocation2]  }
  0x49   : > { %p885_p1 = scmp.ne.s32.totalorder %s1148_s6, %s884_s27  ;;  %s889_s26 = sshll.u32 %s1000_s4, 4  ;;  %s890_s26 = int_to_ptr.vmem [resolvable:$false] %s889_s26 }
  0x4a   : > { %s891_s19 = scalar_lea.vmem %s890_s26, 1024  ;;  %p892_p6 = scmp.lt.s32.totalorder %s1148_s6, %s890_s26 }
  0x4b   : > { %p887_p3 = pnand %p885_p1, %p1106_p2  ;;  %p893_p12 = scmp.lt.s32.totalorder %s891_s19, %s884_s27 }
  0x4d   : > { %p888_p9 = pneg %p887_p3  ;;  %p894_p0 = por %p893_p12, %p892_p6 }
  0x4f   : > { %p895_p11 = pnand %p894_p0, %p888_p9 }
  0x51   : > { %898 = shalt.err (!%p895_p11)
}
  0x52   : > { %s1312_s9 = smov 8   ;;  %s1313_s17 = smov 128  }
  0x53   : > { %771 = dma.hbm_to_vmem [thread:$0]  (!%p1083_p13), %s1138_s30, 512, %s1148_s6, %s145_s7, %s1313_s17, %s1313_s17, %s1312_s9  }
  0x54   : > { %s710_s11 = sshll.u32 %s995_s15, 7  ;;  %s190_s27 = scalar_lea.vmem [#allocation7], %s709_s5 }
  0x55   : > { %s195_s26 = scalar_lea.hbm %s1289_s2, %s710_s11  ;;  %s197_s19 = sshll.u32 %s190_s27, 4  ;;  %s198_s19 = int_to_ptr.vmem [resolvable:$true] %s197_s19 }
  0x56   : > { %s899_s0 = scalar_lea.hbm %s195_s26, 128  ;;  %s904_s14 = scalar_lea.hbm %s1289_s2, 256 }
  0x57   : > { %p900_p11 = scmp.ne.s32.totalorder %s195_s26, %s899_s0  ;;  %p905_p7 = scmp.lt.s32.totalorder %s195_s26, %s1289_s2 }
  0x58   : > { %p906_p8 = scmp.lt.s32.totalorder %s904_s14, %s899_s0 }
  0x59   : > { %p902_p4 = pnand %p900_p11, %p1106_p2 }
  0x5a   : > { %p907_p10 = por %p906_p8, %p905_p7 }
  0x5b   : > { %p903_p5 = pneg %p902_p4 }
  0x5d   : > { %p908_p1 = pnand %p907_p10, %p903_p5 }
  0x5f   : > { %911 = shalt.err (!%p908_p1)
}
  0x60   : > { %s912_s25 = scalar_lea.vmem %s198_s19, 128  ;;  %s1001_s6 = smov [#allocation7]  }
  0x61   : > { %p913_p3 = scmp.ne.s32.totalorder %s198_s19, %s912_s25  ;;  %s917_s5 = sshll.u32 %s1001_s6, 4  ;;  %s918_s5 = int_to_ptr.vmem [resolvable:$false] %s917_s5 }
  0x62   : > { %s919_s7 = scalar_lea.vmem %s918_s5, 256  ;;  %p920_p12 = scmp.lt.s32.totalorder %s198_s19, %s918_s5 }
  0x63   : > { %p915_p9 = pnand %p913_p3, %p1106_p2  ;;  %p921_p0 = scmp.lt.s32.totalorder %s919_s7, %s912_s25 }
  0x65   : > { %p916_p6 = pneg %p915_p9  ;;  %p922_p11 = por %p921_p0, %p920_p12 }
  0x67   : > { %p923_p4 = pnand %p922_p11, %p916_p6 }
  0x69   : > { %926 = shalt.err (!%p923_p4)
}
  0x6a   : > { %777 = dma.hbm_to_vmem [thread:$0]  (!%p1083_p13), %s195_s26, 128, %s198_s19, %s1100_s8  }
  0x6b   : > { %p1314_p5 = scmp.ne.s32.totalorder %s1311_s29, 0 }
  0x6c   : > { %s1197_s0 = sand.u32 (!%p1314_p5), 1, %s987_s13   ;;  %p1315_p2 = scmp.ne.s32.totalorder (!%p1314_p5), %s1303_s22, 0 }
  0x6d   : > { %206 = sbr.rel (%p1314_p5) target bundleno = 889 (0x379), region = 32  ;;  %s712_s1 = sshll.u32 (!%p1314_p5), %s1197_s0, 5 }
  0x6e   : > { %s209_s14 = scalar_lea.sflag (!%p1314_p5), [#allocation3], %s1197_s0  ;;  %s1201_s18 = scalar_lea.vmem (!%p1314_p5), [#allocation2], %s712_s1 }
  0x72   : > { %970 = dma.done.wait (%p1315_p2), %s209_s14, 512  }
  0x73   : > { %972 = vsyncadd (%p1315_p2), %s209_s14, 4294966784  ;;  %s217_s21 = sand.u32 1, %s1045_s16   ;;  %s221_s8 = scalar_lea.vmem [#allocation5], %s712_s1 }
  0x74   : > { %s218_s28 = scalar_lea.sflag [#allocation6], %s217_s21 }
  0x75   : > { %974 = dma.done.wait (%p1315_p2), %s218_s28, 640  }
  0x76   : > { %976 = vsyncadd (%p1315_p2), %s218_s28, 4294966656  ;;  %v1002_v0 = vmov -1e+30   ;;  %v270_v1 = vld [vmem:[%s221_s8 + $0x18] sm:$0xff]  ;;  %v269_v2 = vld [vmem:[%s221_s8 + $0x10] sm:$0xff]  ;;  %vm271_vm0 = vcmask 261120   ;;  %v386_v24 = vlaneseq }
  0x77   : > { %420 = vmax.xlane.f32.xlu1 %v1002_v0  ;;  %734 = vmatprep.subr.mxu0 %v270_v1  ;;  %v268_v3 = vld [vmem:[%s221_s8 + $0x8] sm:$0xff]  ;;  %v267_v4 = vld [vmem:[%s221_s8] sm:$0xff]  ;;  %v265_v7 = vld [vmem:[%s1201_s18 + $0x10] sm:$0xff]  ;;  %s714_s22 = sshll.u32 %s1197_s0, 3  ;;  %vm558_vm3 = vcmask 1040384   ;;  %vm505_vm6 = vcmask 7168  }
  0x78   : > { %748 = vmatprep.subr.mxu1 %v270_v1  ;;  %735 = vmatpush3.msra.mxu0 %v270_v1  ;;  %v263_v5 = vld [vmem:[%s1201_s18] sm:$0xff]  ;;  %v264_v6 = vld [vmem:[%s1201_s18 + $0x8] sm:$0xff]  ;;  %v266_v8 = vld [vmem:[%s1201_s18 + $0x18] sm:$0xff]  ;;  %s230_s10 = scalar_lea.vmem [#allocation7], %s714_s22  ;;  %v387_v26 = vand.u32 127, %v386_v24  ;;  %s721_s17 = sshll.u32 %s1045_s16, 7 }
  0x79   : > { %752 = vmatpush3.msra.mxu1 %v270_v1  ;;  %736 = vmatprep.subr.mxu0 %v269_v2  ;;  %v369_v9 = vld [vmem:[%s230_s10] sm:$0xff]  ;;  %s262_s20 = scalar_lea.vmem [#allocation8], %s714_s22  ;;  %s1250_s30 = scalar_lea.hbm %s1290_s3, %s721_s17 }
  0x7a   : > { %749 = vmatprep.subr.mxu1 %v269_v2  ;;  %737 = vmatpush3.msra.mxu0 %v269_v2  ;;  %v371_v10 = vunpack.c.1.s8 %v369_v9  ;;  %v370_v12 = vunpack.c.0.s8 %v369_v9  ;;  %v372_v14 = vunpack.c.2.s8 %v369_v9  ;;  %v373_v17 = vunpack.c.3.s8 %v369_v9  ;;  %s587_s4 = sshll.u32 %s262_s20, 4  ;;  %s574_s25 = scalar_lea.sflag [#allocation4], %s1197_s0  ;;  %s588_s4 = int_to_ptr.vmem [resolvable:$true] %s587_s4 }
  0x7b   : > { %422 = vmax.xlane.f32.xlu1 %v1002_v0  ;;  %753 = vmatpush3.msra.mxu1 %v269_v2  ;;  %vm388_vm1 = vcmp.lt.s32.totalorder %v387_v26, 8  ;;  %s927_s6 = scalar_lea.vmem %s588_s4, 128  ;;  %p1316_p7 = scmp.ne.s32.totalorder %s1304_s23, 0 }
  0x7c   : > { %738 = vmatprep.subr.mxu0 %v268_v3  ;;  %750 = vmatprep.subr.mxu1 %v268_v3  ;;  %v375_v11 = vcvt.s32.f32 %v371_v10  ;;  %v374_v13 = vcvt.s32.f32 %v370_v12  ;;  %v376_v16 = vcvt.s32.f32 %v372_v14  ;;  %v1221_v19 = vcvt.s32.f32 %v373_v17  ;;  %p928_p13 = scmp.ne.s32.totalorder %s588_s4, %s927_s6  ;;  %s1003_s16 = smov [#allocation8]  }
  0x7d   : > { %739 = vmatpush3.msra.mxu0 %v268_v3  ;;  %754 = vmatpush3.msra.mxu1 %v268_v3  ;;  %s931_s5 = sshll.u32 %s1003_s16, 4  ;;  %s932_s5 = int_to_ptr.vmem [resolvable:$false] %s931_s5 }
  0x7e   : > { %740 = vmatprep.subr.mxu0 %v267_v4  ;;  %742 = vmatprep.mubr.msk.f32.mxu0 %vm271_vm0, %v263_v5  ;;  %v522_v15 = vadd.f32 %v375_v11, %v374_v13  ;;  %p929_p8 = pnand %p928_p13, %p1316_p7  ;;  %s933_s7 = scalar_lea.vmem %s932_s5, 256 }
  0x7f   : > { %741 = vmatpush3.msra.mxu0 %v267_v4  ;;  %751 = vmatprep.subr.mxu1 %v267_v4  ;;  %p934_p1 = scmp.lt.s32.totalorder %s588_s4, %s932_s5  ;;  %p935_p3 = scmp.lt.s32.totalorder %s933_s7, %s927_s6 }
  0x80   : > { %743 = vmatmul.mubr.msk.f32.vlgmr.msra.gmra.mxu0 %vm271_vm0, %v264_v6  ;;  %755 = vmatpush3.msra.mxu1 %v267_v4  ;;  %v523_v18 = vadd.f32 %v522_v15, %v376_v16  ;;  %p930_p10 = pneg %p929_p8 }
  0x81   : > { %745 = vmatprep.mubr.msk.f32.mxu1 %vm271_vm0, %v265_v7  ;;  %447 = vadd.xlane.f32.xlu1 %v375_v11  ;;  %p936_p9 = por %p935_p3, %p934_p1 }
  0x82   : > { %746 = vmatmul.mubr.msk.f32.vlgmr.msra.gmra.mxu1 %vm271_vm0, %v266_v8  ;;  %v524_v20 = vadd.f32 %v523_v18, %v1221_v19 }
  0x83   : > { %p937_p6 = pnand %p936_p9, %p930_p10 }
  0x84   : > { %v525_v21 = vrot.slane %v524_v20, 4 }
  0x86   : > { %v526_v22 = vadd.f32 %v525_v21, %v524_v20 }
  0x88   : > { %v527_v23 = vrot.slane %v526_v22, 2 }
  0x8a   : > { %v528_v25 = vadd.f32 %v527_v23, %v526_v22 }
  0x8c   : > { %v529_v27 = vrot.slane %v528_v25, 1 }
  0x8e   : > { %v1224_v30 = vadd.f32 %v529_v27, %v528_v25 }
  0x90   : > { %v552_v40 = vadd.f32 1e-06, %v1224_v30  ;;  %vm556_vm2 = vcmp.gt.f32.partialorder %v1224_v30, 0.0 }
  0x92   : > { %819 = vrcp.f32 %v552_v40 }
  0x9f   : > { %v820_v51 = vpop.eup %819 }
 0x100   : > { %v421_v54 = vpop.xlane.xlu1 %420 }
 0x104   : > { %v423_v56 = vpop.xlane.xlu1 %422 }
 0x105   : > { %v425_v58 = vmax.f32 %v421_v54, %v423_v56 }
 0x10a   : > { %v448_v25 = vpop.xlane.xlu1 %447 }
 0x10b   : > { %v482_v26 = vadd.f32 1e-06, %v448_v25  ;;  %vm498_vm5 = vcmp.gt.f32.partialorder %v448_v25, 0.0 }
 0x140   : > { %v744_v28 = vpop.f32.mrf.mxu0 }
 0x141   : > { %v379_v29 = vsub.f32 0.0, %v744_v28 }
 0x142   : > { %v350_v31 = vpop.f32.mrf.mxu0  ;;  %v747_v32 = vpop.f32.mrf.mxu1 }
 0x143   : > { %v378_v33 = vsub.f32 0.0, %v350_v31  ;;  %v381_v34 = vsub.f32 0.0, %v747_v32  ;;  %v391_v35 = vsel %vm388_vm1, %v350_v31, -1e+30  ;;  %v383_v39 = vmul.f32 %v379_v29, %v375_v11 }
 0x144   : > { %v360_v36 = vpop.f32.mrf.mxu1  ;;  %416 = vmax.xlane.f32.xlu0 %v391_v35 }
 0x145   : > { %v380_v37 = vsub.f32 0.0, %v360_v36  ;;  %v382_v38 = vmul.f32 %v378_v33, %v374_v13  ;;  %v385_v43 = vmul.f32 %v381_v34, %v1221_v19 }
 0x147   : > { %v531_v41 = vadd.f32 %v383_v39, %v382_v38  ;;  %v384_v42 = vmul.f32 %v380_v37, %v376_v16 }
 0x148   : > { %418 = vmax.xlane.f32.xlu0 %v1002_v0 }
 0x149   : > { %v532_v44 = vadd.f32 %v531_v41, %v384_v42 }
 0x14b   : > { %v533_v45 = vadd.f32 %v532_v44, %v385_v43 }
 0x14c   : > { %445 = vadd.xlane.f32.xlu0 %v374_v13 }
 0x14d   : > { %v534_v46 = vrot.slane %v533_v45, 4 }
 0x14f   : > { %v535_v47 = vadd.f32 %v534_v46, %v533_v45 }
 0x150   : > { %449 = vadd.xlane.f32.xlu0 %v376_v16 }
 0x151   : > { %v536_v48 = vrot.slane %v535_v47, 2 }
 0x153   : > { %v537_v49 = vadd.f32 %v536_v48, %v535_v47 }
 0x155   : > { %v538_v50 = vrot.slane %v537_v49, 1 }
 0x157   : > { %v539_v52 = vadd.f32 %v538_v50, %v537_v49 }
 0x159   : > { %v554_v53 = vmul.f32 %v820_v51, %v539_v52 }
 0x1cd   : > { %v417_v55 = vpop.xlane.xlu0 %416 }
 0x1d1   : > { %v419_v57 = vpop.xlane.xlu0 %418 }
 0x1d2   : > { %v424_v59 = vmax.f32 %v417_v55, %v419_v57 }
 0x1d4   : > { %v426_v60 = vmax.f32 %v424_v59, %v425_v58 }
 0x1d5   : > { %v446_v24 = vpop.xlane.xlu0 %445 }
 0x1d6   : > { %v427_v61 = vrot.slane %v426_v60, 4  ;;  %v481_v28 = vadd.f32 1e-06, %v446_v24  ;;  %vm497_vm4 = vcmp.gt.f32.partialorder %v446_v24, 0.0 }
 0x1d8   : > { %v428_v62 = vmax.f32 %v426_v60, %v427_v61 }
 0x1d9   : > { %v450_v27 = vpop.xlane.xlu0 %449 }
 0x1da   : > { %v429_v63 = vrot.slane %v428_v62, 2  ;;  %v483_v29 = vadd.f32 1e-06, %v450_v27  ;;  %vm499_vm7 = vcmp.gt.f32.partialorder %v450_v27, 0.0 }
 0x1dc   : > { %v430_v0 = vmax.f32 %v428_v62, %v429_v63 }
 0x1de   : > { %v431_v1 = vrot.slane %v430_v0, 1 }
 0x1e0   : > { %v1229_v2 = vmax.f32 %v430_v0, %v431_v1 }
 0x1e2   : > { %v434_v3 = vsub.f32 -1e+30, %v1229_v2  ;;  %v433_v4 = vsub.f32 %v391_v35, %v1229_v2 }
 0x1e4   : > { %v439_v5 = vmul.f32 1.442695, %v434_v3  ;;  %v437_v6 = vmul.f32 1.442695, %v433_v4 }
 0x1e6   : > { %821 = vpow2.f32 %v439_v5 }
 0x1e7   : > { %823 = vpow2.f32 %v437_v6 }
 0x1f3   : > { %v822_v7 = vpop.eup %821 }
 0x1f4   : > { %v824_v8 = vpop.eup %823  ;;  %463 = vadd.xlane.f32.xlu1 %v822_v7 }
 0x1f5   : > { %461 = vadd.xlane.f32.xlu0 %v824_v8  ;;  %v540_v9 = vadd.f32 %v824_v8, %v822_v7 }
 0x1f7   : > { %v541_v10 = vadd.f32 %v822_v7, %v540_v9 }
 0x1f8   : > { %465 = vadd.xlane.f32.xlu1 %v822_v7 }
 0x1f9   : > { %451 = vadd.xlane.f32.xlu0 %v1221_v19  ;;  %v542_v11 = vadd.f32 %v822_v7, %v541_v10 }
 0x1fb   : > { %v543_v12 = vrot.slane %v542_v11, 4 }
 0x1fc   : > { %467 = vadd.xlane.f32.xlu1 %v822_v7 }
 0x1fd   : > { %453 = vadd.xlane.f32.xlu0 %v382_v38  ;;  %v544_v13 = vadd.f32 %v543_v12, %v542_v11 }
 0x1ff   : > { %v545_v14 = vrot.slane %v544_v13, 2 }
 0x200   : > { %455 = vadd.xlane.f32.xlu1 %v383_v39 }
 0x201   : > { %457 = vadd.xlane.f32.xlu0 %v384_v42  ;;  %v546_v15 = vadd.f32 %v545_v14, %v544_v13 }
 0x203   : > { %v547_v16 = vrot.slane %v546_v15, 1 }
 0x204   : > { %459 = vadd.xlane.f32.xlu1 %v385_v43 }
 0x205   : > { %v548_v17 = vadd.f32 %v547_v16, %v546_v15 }
 0x207   : > { %825 = vlog2.f32 %v548_v17 }
 0x208   : > { %827 = vrcp.f32 %v482_v26 }
 0x209   : > { %829 = vrcp.f32 %v481_v28 }
 0x214   : > { %v826_v18 = vpop.eup %825 }
 0x215   : > { %v550_v20 = vmul.f32 0.6931472, %v826_v18  ;;  %v828_v36 = vpop.eup %827 }
 0x216   : > { %v830_v37 = vpop.eup %829 }
 0x217   : > { %v551_v21 = vadd.f32 %v550_v20, %v1229_v2 }
 0x219   : > { %v555_v19 = vadd.f32 %v554_v53, %v551_v21 }
 0x21b   : > { %v557_v22 = vsel %vm556_vm2, %v555_v19, 0.0 }
 0x21c   : > { %v559_v23 = vsel %vm558_vm3, %v557_v22, 0.0 }
 0x21d   : > { %560 = vadd.xlane.f32.xlu1 %v559_v23 }
 0x27d   : > { %v464_v31 = vpop.xlane.xlu1 %463 }
 0x27e   : > { %831 = vlog2.f32 %v464_v31  ;;  %v462_v32 = vpop.xlane.xlu0 %461 }
 0x27f   : > { %833 = vlog2.f32 %v462_v32 }
 0x280   : > { %835 = vrcp.f32 %v483_v29 }
 0x281   : > { %v466_v33 = vpop.xlane.xlu1 %465 }
 0x282   : > { %837 = vlog2.f32 %v466_v33  ;;  %v452_v30 = vpop.xlane.xlu0 %451 }
 0x283   : > { %v484_v34 = vadd.f32 1e-06, %v452_v30  ;;  %vm500_vm8 = vcmp.gt.f32.partialorder %v452_v30, 0.0 }
 0x285   : > { %839 = vrcp.f32 %v484_v34  ;;  %v468_v35 = vpop.xlane.xlu1 %467 }
 0x286   : > { %841 = vlog2.f32 %v468_v35  ;;  %v454_v39 = vpop.xlane.xlu0 %453 }
 0x287   : > { %v486_v49 = vmul.f32 %v830_v37, %v454_v39 }
 0x289   : > { %v456_v40 = vpop.xlane.xlu1 %455 }
 0x28a   : > { %v488_v46 = vmul.f32 %v828_v36, %v456_v40  ;;  %v458_v50 = vpop.xlane.xlu0 %457 }
 0x28b   : > { %v832_v38 = vpop.eup %831 }
 0x28c   : > { %v834_v41 = vpop.eup %833  ;;  %v472_v42 = vmul.f32 0.6931472, %v832_v38 }
 0x28d   : > { %v470_v43 = vmul.f32 0.6931472, %v834_v41  ;;  %v836_v44 = vpop.eup %835  ;;  %v460_v60 = vpop.xlane.xlu1 %459 }
 0x28e   : > { %v478_v45 = vadd.f32 %v472_v42, %v1229_v2  ;;  %v490_v57 = vmul.f32 %v836_v44, %v458_v50 }
 0x28f   : > { %v838_v47 = vpop.eup %837  ;;  %v477_v48 = vadd.f32 %v470_v43, %v1229_v2 }
 0x290   : > { %v474_v51 = vmul.f32 0.6931472, %v838_v47  ;;  %v494_v52 = vadd.f32 %v488_v46, %v478_v45 }
 0x291   : > { %v493_v53 = vadd.f32 %v486_v49, %v477_v48 }
 0x292   : > { %v840_v54 = vpop.eup %839  ;;  %v502_v55 = vsel %vm498_vm5, %v494_v52, 0.0  ;;  %v479_v56 = vadd.f32 %v474_v51, %v1229_v2 }
 0x293   : > { %v842_v58 = vpop.eup %841  ;;  %v501_v59 = vsel %vm497_vm4, %v493_v53, 0.0  ;;  %v507_v0 = vsel %vm505_vm6, %v502_v55, 0.0  ;;  %v492_v4 = vmul.f32 %v840_v54, %v460_v60 }
 0x294   : > { %v476_v61 = vmul.f32 0.6931472, %v842_v58  ;;  %v495_v62 = vadd.f32 %v490_v57, %v479_v56  ;;  %v506_v63 = vsel %vm505_vm6, %v501_v59, 0.0 }
 0x295   : > { %v508_v7 = vadd.f32 %v507_v0, %v506_v63 }
 0x296   : > { %v503_v1 = vsel %vm499_vm7, %v495_v62, 0.0  ;;  %v480_v3 = vadd.f32 %v476_v61, %v1229_v2 }
 0x297   : > { %v509_v5 = vsel %vm505_vm6, %v503_v1, 0.0 }
 0x298   : > { %v496_v6 = vadd.f32 %v492_v4, %v480_v3  ;;  %v510_v9 = vadd.f32 %v509_v5, %v508_v7 }
 0x29a   : > { %v504_v8 = vsel %vm500_vm8, %v496_v6, 0.0 }
 0x29b   : > { %v511_v10 = vsel %vm505_vm6, %v504_v8, 0.0 }
 0x29c   : > { %v512_v11 = vadd.f32 %v511_v10, %v510_v9 }
 0x29e   : > { %513 = vadd.xlane.f32.xlu0 %v512_v11 }
 0x2a6   : > { %v561_v12 = vpop.xlane.xlu1 %560 }
 0x2a7   : > { %v562_v13 = vrot.slane %v561_v12, 4 }
 0x2a9   : > { %v563_v14 = vadd.f32 %v562_v13, %v561_v12 }
 0x2ab   : > { %v564_v15 = vrot.slane %v563_v14, 2 }
 0x2ad   : > { %v565_v18 = vadd.f32 %v564_v15, %v563_v14 }
 0x2af   : > { %v566_v19 = vrot.slane %v565_v18, 1 }
 0x2b1   : > { %v567_v24 = vadd.f32 %v566_v19, %v565_v18 }
 0x327   : > { %v514_v16 = vpop.xlane.xlu0 %513 }
 0x328   : > { %v515_v2 = vrot.slane %v514_v16, 4 }
 0x32a   : > { %v516_v17 = vadd.f32 %v515_v2, %v514_v16 }
 0x32c   : > { %v517_v20 = vrot.slane %v516_v17, 2 }
 0x32e   : > { %v518_v21 = vadd.f32 %v517_v20, %v516_v17 }
 0x330   : > { %v519_v22 = vrot.slane %v518_v21, 1 }
 0x332   : > { %v520_v23 = vadd.f32 %v519_v22, %v518_v21 }
 0x334   : > { %756 = vpush %v520_v23 }
 0x335   : > { %758 = vpush %v567_v24 }
 0x365   : > { %s757_s29 = spop %756 }
 0x366   : > { %s759_s9 = spop %758 }
 0x367   : > { %s569_s11 = sadd.f32 %s759_s9, %s757_s29 }
 0x369   : > { %s570_s26 = smul.f32 0.5, %s569_s11 }
 0x36b   : > { %v571_v25 = vstv %s570_s26 }
 0x36c   : > { %572 = vst [vmem:[%s262_s20] sm:$0xff] %v571_v25 }
 0x36d   : > { %940 = shalt.err (!%p937_p6)
}
 0x36e   : > { %s941_s1 = scalar_lea.hbm %s1250_s30, 128  ;;  %s945_s18 = scalar_lea.hbm %s1290_s3, 256 }
 0x36f   : > { %p942_p12 = scmp.ne.s32.totalorder %s1250_s30, %s941_s1  ;;  %p946_p4 = scmp.lt.s32.totalorder %s1250_s30, %s1290_s3 }
 0x370   : > { %p947_p5 = scmp.lt.s32.totalorder %s945_s18, %s941_s1 }
 0x371   : > { %p943_p0 = pnand %p942_p12, %p1316_p7 }
 0x372   : > { %p948_p2 = por %p947_p5, %p946_p4 }
 0x373   : > { %p944_p11 = pneg %p943_p0 }
 0x375   : > { %p949_p13 = pnand %p948_p2, %p944_p11 }
 0x377   : > { %952 = shalt.err (!%p949_p13)
}
 0x378   : > { %766 = dma.vmem_to_hbm [thread:$0]  (%p1316_p7), %s588_s4, 128, %s1250_s30, %s574_s25  }
 0x379 PF: > { %s599_s8 = sand.u32 1, %s983_s12   ;;  %p1317_p8 = scmp.ne.s32.totalorder %s1305_s24, 0 }
 0x37a   : > { %p1318_p10 = scmp.ge.s32.totalorder %s995_s15, 2  ;;  %s600_s22 = scalar_lea.sflag [#allocation4], %s599_s8 }
 0x37c   : > { %p779_p1 = pnand %p1318_p10, %p1317_p8 }
 0x37e   : > { %p780_p3 = pneg %p779_p1 }
 0x380   : > { %978 = dma.done.wait (%p780_p3), %s600_s22, 128  }
 0x381   : > { %980 = vsyncadd (%p780_p3), %s600_s22, 4294967168  ;;  %s1319_s15 = sld [smem:[#allocation13_spill]]  ;;  %s1322_s12 = smov %s987_s13 }
 0x382   : > { %s1320_s10 = sld [smem:[#allocation12_spill]] }
 0x383   : > { %s1321_s14 = sld [smem:[#allocation14_spill]] }
 0x387   : > { %p19_p9 = scmp.ge.s32.totalorder %s1319_s15, 4  }
 0x388   : > { %s1323_s13 = smov %s1320_s10 }
 0x389   :  { %21 = sbr.rel (!%p19_p9) target bundleno = 10 (0xa), region = 101 }
 0x38e   :  { %605 = vsyncpa [#allocation3], 1 }
 0x38f   :  { %607 = vsyncpa [#allocation3 + $0x1], 1 }
 0x390   :  { %608 = vsyncpa [#allocation6], 1 }
 0x391   :  { %610 = vsyncpa [#allocation6 + $0x1], 1 }
 0x392   :  { %611 = vsyncpa [#allocation4], 1 }
 0x393   :  { %613 = vsyncpa [#allocation4 + $0x1], 1 }

</bundles_post_ra>
